<compile_context>
chip_gen: v7x
topology: tpu7x:2x2x1
jax: 0.10.0
libtpu: 0.0.40
codegen_flags: <defaults>
</compile_context>

<pallas_src>
import functools

import jax
import jax.numpy as jnp
from jax.experimental import pallas as pl
from jax.experimental.pallas import tpu as pltpu

_M_CAP = 512    # max rows per output tile
_N_CAP = 512    # max lanes per output tile (multiple of 128)
_K_CAP = 1024   # max contraction depth per grid step (multiple of 128)


def _round_up(v, m):
    return (v + m - 1) // m * m


def _sublane(dtype):
    # Minimum second-minor tile: 8 rows of 32-bit, 16 of 16-bit, 32 of 8-bit.
    itemsize = jnp.dtype(dtype).itemsize
    return max(8, 32 // max(itemsize, 1))


def _pick_tile(dim, cap, align):
    """Largest multiple of `align` that divides `dim` and is <= cap.

    `dim` must itself be a multiple of `align` (so `align` always works).
    """
    t = max(align, (min(cap, dim) // align) * align)
    while dim % t != 0:
        t -= align
    return t


def _cond_linear_kernel(x_ref, w_ref, b_ref, o_ref, acc_ref):
    """One (tm, tn) output tile, accumulating over the K grid axis."""
    k = pl.program_id(2)

    @pl.when(k == 0)
    def _():
        # Seed the accumulator with the bias (replaces zero-fill + final add).
        acc_ref[...] = jnp.broadcast_to(
            b_ref[...].astype(jnp.float32), acc_ref.shape
        )

    # MXU matmul with f32 accumulation; weight already [tk, tn] (no transpose).
    acc_ref[...] += jnp.dot(
        x_ref[...], w_ref[...], preferred_element_type=jnp.float32
    )

    @pl.when(k == pl.num_programs(2) - 1)
    def _():
        o_ref[...] = acc_ref[...].astype(o_ref.dtype)


def _forward(x, w_p, b_p, *, num_out, mxu_dtype):
    """x: [batch, num_in]; w_p: [k_pad, n_pad] (pre-transposed, pre-padded)."""
    batch, num_in = x.shape
    k_pad, n_pad = w_p.shape
    out_dtype = x.dtype
    op_dtype = jnp.dtype(mxu_dtype) if mxu_dtype is not None else jnp.dtype(x.dtype)

    # ---- tile selection (all static / trace-time) --------------------------
    sub = _sublane(op_dtype)
    if batch >= _M_CAP:
        tm = _M_CAP
        m_pad = _round_up(batch, tm)
    else:
        tm = _round_up(batch, sub)
        m_pad = tm

    if k_pad <= _K_CAP:
        tk = k_pad                       # full-K block: exempt from (8,128) rule
    else:
        tk = _pick_tile(k_pad, _K_CAP, 128)

    tn = _pick_tile(n_pad, _N_CAP, 128)
    if (m_pad // tm) == 1 and (n_pad // tn) == 1 and n_pad >= 256:
        # Give v7x's second TensorCore at least one parallel block.
        tn = _pick_tile(n_pad, n_pad // 2, 128)

    grid = (m_pad // tm, n_pad // tn, k_pad // tk)

    # ---- activation padding only when actually needed ----------------------
    if m_pad != batch or k_pad != num_in:
        x_in = jnp.pad(x, ((0, m_pad - batch), (0, k_pad - num_in)))
    else:
        x_in = x
    if x_in.dtype != op_dtype:
        x_in = x_in.astype(op_dtype)

    # ---- VMEM budget derived from the double-buffered working set ----------
    op_sz = jnp.dtype(op_dtype).itemsize
    out_sz = jnp.dtype(out_dtype).itemsize
    b_sz = jnp.dtype(b_p.dtype).itemsize
    working_set = (
        2 * (tm * tk + tk * tn) * op_sz   # x / w tiles, double-buffered
        + 2 * tn * b_sz                   # bias tile
        + 2 * tm * tn * out_sz            # output tile
        + tm * tn * 4                     # f32 accumulator scratch
    )
    vmem_limit = min(48 * 1024 * 1024,
                     max(int(working_set * 1.5) + (2 << 20), 16 * 1024 * 1024))

    cost = pl.CostEstimate(
        flops=2 * m_pad * n_pad * k_pad,
        transcendentals=0,
        bytes_accessed=(x_in.size * op_sz + w_p.size * w_p.dtype.itemsize
                        + b_p.size * b_sz + m_pad * n_pad * out_sz),
    )

    out_p = pl.pallas_call(
        _cond_linear_kernel,
        out_shape=jax.ShapeDtypeStruct((m_pad, n_pad), out_dtype),
        grid_spec=pltpu.PrefetchScalarGridSpec(
            num_scalar_prefetch=0,
            grid=grid,
            in_specs=[
                pl.BlockSpec((tm, tk), lambda i, j, k: (i, k)),   # x tile
                pl.BlockSpec((tk, tn), lambda i, j, k: (k, j)),   # w tile
                pl.BlockSpec((1, tn), lambda i, j, k: (0, j)),    # bias (N only)
            ],
            out_specs=pl.BlockSpec((tm, tn), lambda i, j, k: (i, j)),
            scratch_shapes=[pltpu.VMEM((tm, tn), jnp.float32)],
        ),
        compiler_params=pltpu.CompilerParams(
            dimension_semantics=("parallel", "parallel", "arbitrary"),
            vmem_limit_bytes=vmem_limit,
        ),
        cost_estimate=cost,
    )(x_in, w_p, b_p)

    # Strip padding (no-op slices when nothing was padded).
    return out_p[:batch, :num_out]


def make_conditional_linear(weight, bias, *, mxu_dtype=None):
    """Build a ConditionalLinear forward with weight prep hoisted out of the call.

    weight: [num_out, num_in]  (PyTorch nn.Linear layout)
    bias:   [num_out]
    mxu_dtype: optionally jnp.bfloat16 to feed the MXU bf16 operands
               (f32 accumulation is kept regardless).
    Returns `apply(x, s) -> out` where `s` is accepted but ignored,
    matching the reference forward.
    """
    num_out, num_in = weight.shape

    # --- one-time layout prep (no per-call weight HBM round-trip) ----------
    k_pad = num_in if num_in <= _K_CAP else _round_up(num_in, 128)
    n_pad = _round_up(num_out, 128)

    w_t = weight.T  # [num_in, num_out]
    w_p = jnp.pad(w_t, ((0, k_pad - num_in), (0, n_pad - num_out)))
    b_p = jnp.pad(bias.reshape(1, num_out), ((0, 0), (0, n_pad - num_out)))
    if mxu_dtype is not None:
        w_p = w_p.astype(mxu_dtype)
    w_p = jax.device_put(w_p)
    b_p = jax.device_put(b_p)

    fwd = jax.jit(
        functools.partial(_forward, num_out=num_out, mxu_dtype=mxu_dtype)
    )

    def apply(x, s):
        del s  # conditioning input is ignored, exactly as in the reference
        return fwd(x, w_p, b_p)

    return apply


def init_conditional_linear_params(key, num_in, num_out, dtype=jnp.float32):
    # Deterministic synthetic init mimicking nn.Linear's uniform(-1/sqrt(fan_in), ...).
    kw, kb = jax.random.split(key)
    bound = 1.0 / jnp.sqrt(jnp.asarray(num_in, dtype))
    weight = jax.random.uniform(kw, (num_out, num_in), dtype, -bound, bound)
    bias = jax.random.uniform(kb, (num_out,), dtype, -bound, bound)
    return weight, bias


if __name__ == "__main__":
    key = jax.random.PRNGKey(0)
    k_x, k_s, k_p = jax.random.split(key, 3)

    batch, num_in, num_out, num_classes = 8, 32, 16, 4

    x = jax.random.normal(k_x, (batch, num_in), jnp.float32)
    # Conditioning input (class ids) — accepted but unused, per the reference module.
    s = jax.random.randint(k_s, (batch,), 0, num_classes)

    weight, bias = init_conditional_linear_params(k_p, num_in, num_out)

    cond_linear = make_conditional_linear(weight, bias)
    out = jax.block_until_ready(cond_linear(x, s))

    # Sanity check against plain JAX reference.
    ref = x @ weight.T + bias
    assert out.shape == (batch, num_out)
    assert jnp.allclose(out, ref, atol=1e-5, rtol=1e-5)

    print("KERNEL_OK")
</pallas_src>

<mosaic_0001>
module attributes {stable_mosaic.version = 11 : i64} {
  func.func @_cond_linear_kernel(%arg0: i32, %arg1: i32, %arg2: i32, %arg3: memref<8x32xf32, #tpu.memory_space<vmem>>, %arg4: memref<32x128xf32, #tpu.memory_space<vmem>>, %arg5: memref<1x128xf32, #tpu.memory_space<vmem>>, %arg6: memref<8x128xf32, #tpu.memory_space<vmem>>, %arg7: memref<8x128xf32, #tpu.memory_space<vmem>>) attributes {dimension_semantics = [#tpu.dimension_semantics<parallel>, #tpu.dimension_semantics<parallel>, #tpu.dimension_semantics<arbitrary>], iteration_bounds = array<i64: 1, 1, 1>, scalar_prefetch = 0 : i64, scratch_operands = 1 : i64, tpu.core_type = #tpu.core_type<tc>, window_params = [{transform_indices = @transform_0, window_bounds = array<i64: 8, 32>}, {transform_indices = @transform_1, window_bounds = array<i64: 32, 128>}, {transform_indices = @transform_2, window_bounds = array<i64: 1, 128>}, {transform_indices = @transform_3, window_bounds = array<i64: 8, 128>}]} {
    %c0_i32 = arith.constant 0 : i32
    %0 = arith.cmpi eq, %arg2, %c0_i32 : i32
    %1 = arith.extui %0 : i1 to i32
    %c0_i32_0 = arith.constant 0 : i32
    %2 = arith.cmpi ne, %1, %c0_i32_0 : i32
    scf.if %2 {
      %c0_10 = arith.constant 0 : index
      %c0_11 = arith.constant 0 : index
      %12 = vector.load %arg5[%c0_10, %c0_11] : memref<1x128xf32, #tpu.memory_space<vmem>>, vector<1x128xf32>
      %13 = vector.shape_cast %12 : vector<1x128xf32> to vector<1x128xf32>
      %14 = vector.broadcast %13 : vector<1x128xf32> to vector<8x128xf32>
      %c0_12 = arith.constant 0 : index
      %c0_13 = arith.constant 0 : index
      %15 = vector.load %arg7[%c0_12, %c0_13] : memref<8x128xf32, #tpu.memory_space<vmem>>, vector<8x128xf32>
      tpu.vector_store %arg7[%c0_12, %c0_13], %14 {strides = array<i32>} : memref<8x128xf32, #tpu.memory_space<vmem>>, vector<8x128xf32>,
    } else {
    }
    %c0 = arith.constant 0 : index
    %c0_1 = arith.constant 0 : index
    %3 = vector.load %arg7[%c0, %c0_1] : memref<8x128xf32, #tpu.memory_space<vmem>>, vector<8x128xf32>
    %c0_2 = arith.constant 0 : index
    %c0_3 = arith.constant 0 : index
    %4 = vector.load %arg3[%c0_2, %c0_3] : memref<8x32xf32, #tpu.memory_space<vmem>>, vector<8x32xf32>
    %c0_4 = arith.constant 0 : index
    %c0_5 = arith.constant 0 : index
    %5 = vector.load %arg4[%c0_4, %c0_5] : memref<32x128xf32, #tpu.memory_space<vmem>>, vector<32x128xf32>
    %cst = arith.constant dense<0.000000e+00> : vector<8x128xf32>
    %6 = tpu.matmul %4, %5, %cst {dimension_numbers = #tpu.dot_dimension_numbers<[1], [0], [0], [1], [0, 0, 1, 1], [], []>} : vector<8x32xf32>, vector<32x128xf32>, vector<8x128xf32> -> vector<8x128xf32>
    %7 = arith.addf %3, %6 : vector<8x128xf32>
    %c0_6 = arith.constant 0 : index
    %c0_7 = arith.constant 0 : index
    %8 = vector.load %arg7[%c0_6, %c0_7] : memref<8x128xf32, #tpu.memory_space<vmem>>, vector<8x128xf32>
    tpu.vector_store %arg7[%c0_6, %c0_7], %7 {strides = array<i32>} : memref<8x128xf32, #tpu.memory_space<vmem>>, vector<8x128xf32>,
    %c0_i32_8 = arith.constant 0 : i32
    %9 = arith.cmpi eq, %arg2, %c0_i32_8 : i32
    %10 = arith.extui %9 : i1 to i32
    %c0_i32_9 = arith.constant 0 : i32
    %11 = arith.cmpi ne, %10, %c0_i32_9 : i32
    scf.if %11 {
      %c0_10 = arith.constant 0 : index
      %c0_11 = arith.constant 0 : index
      %12 = vector.load %arg7[%c0_10, %c0_11] : memref<8x128xf32, #tpu.memory_space<vmem>>, vector<8x128xf32>
      %c0_12 = arith.constant 0 : index
      %c0_13 = arith.constant 0 : index
      %13 = vector.load %arg6[%c0_12, %c0_13] : memref<8x128xf32, #tpu.memory_space<vmem>>, vector<8x128xf32>
      tpu.vector_store %arg6[%c0_12, %c0_13], %12 {strides = array<i32>} : memref<8x128xf32, #tpu.memory_space<vmem>>, vector<8x128xf32>,
    } else {
    }
    return
  }
  func.func @transform_0(%arg0: i32, %arg1: i32, %arg2: i32) -> (i32, i32) {
    %c0_i32 = arith.constant 0 : i32
    return %arg0, %arg2 : i32, i32
  }
  func.func @transform_1(%arg0: i32, %arg1: i32, %arg2: i32) -> (i32, i32) {
    %c0_i32 = arith.constant 0 : i32
    return %arg2, %arg1 : i32, i32
  }
  func.func @transform_2(%arg0: i32, %arg1: i32, %arg2: i32) -> (i32, i32) {
    %c0_i32 = arith.constant 0 : i32
    %c0_i32_0 = arith.constant 0 : i32
    return %c0_i32, %arg1 : i32, i32
  }
  func.func @transform_3(%arg0: i32, %arg1: i32, %arg2: i32) -> (i32, i32) {
    %c0_i32 = arith.constant 0 : i32
    return %arg0, %arg1 : i32, i32
  }
}

</mosaic_0001>

<bundles_post_ra>
// kernel: _forward.1
= control target key start
LH: loop header
LB: loop body
LE: loop exit
PB: predicated region body
PF: predicated region fallthrough
CT: control target
= control target key end

     0   :  { %8 = vsyncpa [#allocation4], 0  ;;  %s334_s0 = inlined_call_operand.hbm [shape: f32[8,32], index: 0, kind: input, shape index: {}]   ;;  %s335_s1 = inlined_call_operand.hbm [shape: f32[32,128], index: 1, kind: input, shape index: {}]   ;;  %s336_s2 = inlined_call_operand.vmem [shape: f32[1,128], index: 2, kind: input, shape index: {}]   ;;  %s337_s3 = inlined_call_operand.hbm [shape: f32[8,128], index: 3, kind: output, shape index: {}]  }
   0x1   :  { %9 = vsyncpa [#allocation7], 0 }
   0x2   :  { %10 = vsyncpa [#allocation5], 0  ;;  %s260_s12 = smov [#allocation3]   ;;  %s261_s14 = smov [#allocation6]  }
   0x3   :  { %s17_s13 = sshll.u32 %s260_s12, 4  ;;  %s26_s15 = sshll.u32 %s261_s14, 4  ;;  %s18_s13 = int_to_ptr.vmem [resolvable:$true] %s17_s13  ;;  %s288_s15 = int_to_ptr.vmem [resolvable:$true] %s26_s15 }
   0x4   :  { %s188_s18 = scalar_lea.hbm %s334_s0, 128 }
   0x5   :  { %p189_p0 = scmp.ne.s32.totalorder %s334_s0, %s188_s18  ;;  %p192_p1 = scmp.lt.u32.totalorder %s188_s18, %s334_s0 }
   0x7   :  { %p194_p2 = pnand %p192_p1, %p189_p0 }
   0x9   :  { %197 = shalt.err (!%p194_p2)
}
   0xa   :  { %s198_s23 = scalar_lea.vmem %s18_s13, 128  ;;  %p203_p4 = scmp.lt.s32.totalorder %s18_s13, %s18_s13 }
   0xb   :  { %p199_p3 = scmp.ne.s32.totalorder %s18_s13, %s198_s23  ;;  %p204_p5 = scmp.lt.s32.totalorder %s198_s23, %s198_s23 }
   0xd   :  { %p205_p6 = por %p204_p5, %p203_p4 }
   0xf   :  { %p206_p7 = pnand %p205_p6, %p199_p3 }
  0x11   :  { %209 = shalt.err (!%p206_p7)
}
  0x12   :  { %20 = dma.hbm_to_vmem [thread:$0]  %s334_s0, 128, %s18_s13, [#allocation4]  }
  0x13   :  { %s210_s28 = scalar_lea.hbm %s335_s1, 512 }
  0x14   :  { %p211_p8 = scmp.ne.s32.totalorder %s335_s1, %s210_s28  ;;  %p214_p9 = scmp.lt.u32.totalorder %s210_s28, %s335_s1 }
  0x16   :  { %p216_p10 = pnand %p214_p9, %p211_p8 }
  0x18   :  { %219 = shalt.err (!%p216_p10)
}
  0x19   :  { %s220_s6 = scalar_lea.vmem %s288_s15, 512  ;;  %p225_p12 = scmp.lt.s32.totalorder %s288_s15, %s288_s15 }
  0x1a   :  { %p221_p11 = scmp.ne.s32.totalorder %s288_s15, %s220_s6  ;;  %p226_p13 = scmp.lt.s32.totalorder %s220_s6, %s220_s6 }
  0x1c   :  { %p227_p0 = por %p226_p13, %p225_p12 }
  0x1e   :  { %p228_p1 = pnand %p227_p0, %p221_p11 }
  0x20   :  { %231 = shalt.err (!%p228_p1)
}
  0x21   :  { %s262_s0 = smov 128   ;;  %s263_s7 = smov 8  }
  0x22   :  { %32 = dma.hbm_to_vmem [thread:$0]  %s335_s1, 512, %s288_s15, [#allocation7], %s262_s0, %s262_s0, %s263_s7  }
  0x23   :  { %254 = dma.done.wait [#allocation4], 128  }
  0x24   :  { %255 = vsyncadd [#allocation4], 4294967168 }
  0x25   :  { %256 = dma.done.wait [#allocation7], 512  }
  0x26   :  { %257 = vsyncadd [#allocation7], 4294966784  ;;  %v264_v0 = vmov 0.0|0.0   ;;  %vm265_vm0 = vmmov 0   ;;  %v266_v1 = vmov 0.0   ;;  %v55_v2 = vld [vmem:[#allocation6] sm:$0xff] }
  0x27   :  { %174 = vmatprep.subr.bf16.mxu0 %v264_v0  ;;  %171 = vmatprep.mubr.msk.f32.mxu0 %vm265_vm0, %v266_v1  ;;  %v56_v3 = vld [vmem:[#allocation6 + $0x8] sm:$0xff]  ;;  %v57_v4 = vld [vmem:[#allocation6 + $0x10] sm:$0xff]  ;;  %v58_v6 = vld [vmem:[#allocation6 + $0x18] sm:$0xff]  ;;  %vm59_vm1 = vcmask 261120   ;;  %s267_s11 = smov [#allocation8]  }
  0x28   :  { %v175_v5 = vpack.c.bf16 %v56_v3, %v55_v2  ;;  %v178_v7 = vpack.c.bf16 %v58_v6, %v57_v4  ;;  %v54_v8 = vld [vmem:[#allocation3] sm:$0xff]  ;;  %s146_s12 = sshll.u32 %s267_s11, 4  ;;  %s147_s12 = int_to_ptr.vmem [resolvable:$true] %s146_s12 }
  0x29   :  { %v156_v9 = vld [vmem:[%s336_s2] ss:$0 sm:$0xff]  ;;  %s232_s13 = scalar_lea.vmem %s147_s12, 128  ;;  %p237_p3 = scmp.lt.s32.totalorder %s147_s12, %s147_s12 }
  0x2a   :  { %176 = vmatpush3.bf16.msra.mxu0 %v175_v5  ;;  %p233_p2 = scmp.ne.s32.totalorder %s147_s12, %s232_s13  ;;  %p238_p4 = scmp.lt.s32.totalorder %s232_s13, %s232_s13 }
  0x2b   :  { %177 = vmatprep.subr.bf16.mxu0 %v264_v0 }
  0x2c   :  { %p239_p5 = por %p238_p4, %p237_p3 }
  0x2e   :  { %179 = vmatpush3.bf16.msra.mxu0 %v178_v7  ;;  %p240_p6 = pnand %p239_p5, %p233_p2 }
  0x31   :  { %172 = vmatmul.mubr.msk.f32.vlgmr.msra.gmra.mrb[0].mxu0 %vm59_vm1, %v54_v8 }
 0x104   :  { %v129_v10 = vpop.f32.mrb[0].mxu0 }
 0x105   :  { %v133_v11 = vadd.f32 %v156_v9, %v129_v10  ;;  %v173_v12 = vpop.f32.mrb[1].mxu0 }
 0x107   :  { %139 = vst [vmem:[#allocation8] sm:$0xff] %v133_v11 }
 0x108   :  { %243 = shalt.err (!%p240_p6)
}
 0x109   :  { %s244_s16 = scalar_lea.hbm %s337_s3, 128 }
 0x10a   :  { %p245_p7 = scmp.ne.s32.totalorder %s337_s3, %s244_s16  ;;  %p248_p8 = scmp.lt.u32.totalorder %s244_s16, %s337_s3 }
 0x10c   :  { %p250_p9 = pnand %p248_p8, %p245_p7 }
 0x10e   :  { %253 = shalt.err (!%p250_p9)
}
 0x10f   :  { %149 = dma.vmem_to_hbm [thread:$0]  %s147_s12, 128, %s337_s3, [#allocation5]  }
 0x110   :  { %258 = dma.done.wait [#allocation5], 128  }
 0x111   :  { %259 = vsyncadd [#allocation5], 4294967168 }
 0x112   :  { %153 = vsyncpa [#allocation4], 1 }
 0x113   :  { %154 = vsyncpa [#allocation7], 1 }
 0x114   :  { %155 = vsyncpa [#allocation5], 1 }

</bundles_post_ra>
